<compile_context>
chip_gen: v5e
topology: v5e:2x2
jax: 0.10.0
libtpu: 0.0.40
codegen_flags: <defaults>
</compile_context>

<pallas_src>
import functools
import math

import jax
import jax.numpy as jnp
from jax import lax
from jax.experimental import pallas as pl
from jax.experimental.pallas import tpu as pltpu


def plastic_linear_kernel(x_ref, h_ref, w_ref, s_ref, lr_ref, b_ref,
                          out_ref, hebb_out_ref, *, use_mxu, compute_dtype,
                          mxu_precision):
    f32 = jnp.float32
    cdt = compute_dtype

    x = x_ref[...]                           # (BB, IN), storage dtype
    h = h_ref[...].astype(cdt)               # (BB, BO, IN)
    s = s_ref[...].astype(cdt)               # (BO, IN)
    lr = lr_ref[...].astype(cdt)             # (BO, IN)
    bias = b_ref[...].astype(f32)            # (1, BO)

    uin = x.astype(cdt)[:, None, :]          # (BB, 1, IN)

    if use_mxu:
        # Static-weight term on the (otherwise idle) MXU, contracting IN with
        # IN directly -- no transpose.  f32 accumulation.
        xd, wd = x, w_ref[...]
        if xd.dtype != wd.dtype:
            xd, wd = xd.astype(f32), wd.astype(f32)
        out_w = lax.dot_general(
            xd, wd, dimension_numbers=(((1,), (1,)), ((), ())),
            preferred_element_type=f32, precision=mxu_precision)   # (BB, BO)
        plast = jnp.sum((uin * (s[None] * h)).astype(f32), axis=-1)
        out_pre = out_w + plast                                    # (BB, BO) f32
    else:
        # Tiny-tile path: one fused VPU pass, no MXU push/pop, no transpose.
        w = w_ref[...].astype(cdt)
        out_pre = jnp.sum((uin * (w[None] + s[None] * h)).astype(f32), axis=-1)

    # Oja rule: hebb' = hebb + (lr*uout) * (uin - uout*hebb).  out_pre stays
    # f32; the elementwise update runs in compute_dtype (bf16 on v6e/v7x when
    # hebb is stored in bf16).
    uout = out_pre.astype(cdt)[:, :, None]   # (BB, BO, 1)
    hebb_new = h + (lr * uout) * (uin - uout * h)
    hebb_out_ref[...] = hebb_new.astype(hebb_out_ref.dtype)

    # Bias is added after the hebb update (matches the PyTorch ordering).
    out_ref[...] = (out_pre + bias).astype(out_ref.dtype)


def _pick_block(dim, target, align):
    """Largest divisor of `dim` that is <= target and a multiple of `align`
    (or equal to `dim`, which always satisfies the TPU layout rule)."""
    target = min(dim, max(1, target))
    for d in range(target, 0, -1):
        if dim % d == 0 and (d % align == 0 or d == dim):
            return d
    return dim


def _vmem_capacity_bytes():
    """Per-TensorCore VMEM capacity; conservative 64 MiB (v7x) fallback."""
    try:
        cap = int(pltpu.get_tpu_info().vmem_capacity_bytes)
        if cap > 0:
            return cap
    except Exception:
        pass
    return 64 * 1024 * 1024


def _has_bf16_vpu():
    """v5e has no bf16 VALU; keep elementwise math in f32 there."""
    try:
        kind = jax.devices()[0].device_kind.lower()
    except Exception:
        return True
    return not ("v5 lite" in kind or "v5lite" in kind or "v5e" in kind)


def plastic_linear(x, hebb, weight, plastic_scale, plastic_lr, bias,
                   *, hebb_dtype=jnp.bfloat16):
    """PlasticLinear forward.  Returns (out, hebb_new).

    Recommended usage: store the recurrent state `hebb` in bf16 (it halves the
    dominant B*OUT*IN HBM stream; out_pre is still accumulated in f32).  The
    hebb input is aliased in place to hebb_new -- donate it from the caller's
    jit for a true zero-copy update.
    """
    B, IN = x.shape
    OUT = weight.shape[0]
    if hebb is None:
        hebb = jnp.zeros((B, OUT, IN), hebb_dtype)
    assert hebb.shape == (B, OUT, IN)
    if plastic_lr.ndim != 2:                  # single_plastic_lr=True -> scalar
        plastic_lr = jnp.broadcast_to(plastic_lr.reshape(()), (OUT, IN))
    plastic_lr = plastic_lr.astype(weight.dtype)
    if bias is None:
        bias = jnp.zeros((OUT,), weight.dtype)
    bias2d = bias.reshape(1, OUT).astype(weight.dtype)

    # bf16 elementwise math only where the VPU supports it and hebb is bf16.
    bf16_math = (hebb.dtype == jnp.bfloat16) and _has_bf16_vpu()
    compute_dtype = jnp.bfloat16 if bf16_math else jnp.float32

    hsz = jnp.dtype(hebb.dtype).itemsize
    psz = jnp.dtype(weight.dtype).itemsize
    xsz = jnp.dtype(x.dtype).itemsize
    csz = jnp.dtype(compute_dtype).itemsize

    capacity = _vmem_capacity_bytes()
    budget = int(0.45 * capacity)       # ~28 MiB on v7x, ~57 MiB on v5e/v6e
    vmem_limit = int(0.9 * capacity)    # never request more than physical VMEM

    def _vmem_bytes(bb, bo):
        hebb_io = 4 * bb * bo * IN * hsz              # hebb in x2 + hebb_new x2
        params = 2 * (3 * bo * IN + bo) * psz         # w/scale/lr/bias, x2
        xio = 2 * bb * IN * xsz + 2 * bb * bo * xsz   # x in x2 + out x2
        tmp = 3 * bb * bo * IN * csz                  # in-kernel temporaries
        return int(1.25 * (hebb_io + params + xio + tmp))  # +25% safety factor

    # Batch tile: keep >= 2-4 grid steps along batch when B allows (pipeline
    # overlap on all chips; megacore sharding on v7x).  Shrink the OUT tile
    # before batch if VMEM is tight.
    b_target = B if B < 16 else max(8, B // 4)
    block_b = _pick_block(B, b_target, 8)
    block_out = OUT
    while _vmem_bytes(block_b, block_out) > budget:
        if block_out > 128 and block_out % 128 == 0:
            nxt = _pick_block(OUT, block_out // 2, 128)
            if nxt < block_out:
                block_out = nxt
                continue
        if block_b > 8:
            nxt = _pick_block(B, block_b // 2, 8)
            if nxt < block_b:
                block_b = nxt
                continue
        break  # cannot shrink further within layout rules

    # MXU pays off once the batch tile has a reasonable number of rows or IN is
    # lane-dense; below that the fused VPU pass wins.
    use_mxu = (block_b >= 64) or (IN >= 128)
    mxu_precision = (lax.Precision.DEFAULT
                     if (x.dtype == jnp.bfloat16 and weight.dtype == jnp.bfloat16)
                     else lax.Precision.HIGH)

    # Batch is the fastest-varying grid axis: w/scale/lr/bias tiles (indexed
    # only by o) stay resident; only the small x tile is re-fetched per step.
    grid = (OUT // block_out, B // block_b)

    kernel = functools.partial(plastic_linear_kernel, use_mxu=use_mxu,
                               compute_dtype=compute_dtype,
                               mxu_precision=mxu_precision)

    out, hebb_new = pl.pallas_call(
        kernel,
        out_shape=(
            jax.ShapeDtypeStruct((B, OUT), x.dtype),
            jax.ShapeDtypeStruct((B, OUT, IN), hebb.dtype),
        ),
        grid=grid,
        in_specs=[
            pl.BlockSpec((block_b, IN), lambda o, b: (b, 0)),                 # x
            pl.BlockSpec((block_b, block_out, IN), lambda o, b: (b, o, 0)),   # hebb
            pl.BlockSpec((block_out, IN), lambda o, b: (o, 0)),               # weight
            pl.BlockSpec((block_out, IN), lambda o, b: (o, 0)),               # plastic_scale
            pl.BlockSpec((block_out, IN), lambda o, b: (o, 0)),               # plastic_lr
            pl.BlockSpec((1, block_out), lambda o, b: (0, o)),                # bias
        ],
        out_specs=(
            pl.BlockSpec((block_b, block_out), lambda o, b: (b, o)),
            pl.BlockSpec((block_b, block_out, IN), lambda o, b: (b, o, 0)),
        ),
        # hebb (input 1) is the recurrent state: update it in place.
        input_output_aliases={1: 1},
        compiler_params=pltpu.CompilerParams(
            dimension_semantics=("parallel", "parallel"),
            vmem_limit_bytes=vmem_limit),
    )(x, hebb, weight, plastic_scale, plastic_lr, bias2d)
    return out, hebb_new


def plastic_linear_reference(x, hebb, weight, plastic_scale, plastic_lr, bias):
    # Pure-JAX mirror of the PyTorch forward (for correctness checking).
    if plastic_lr.ndim != 2:
        plastic_lr = jnp.broadcast_to(plastic_lr.reshape(()), weight.shape)
    w_eff = weight[None, :, :] + plastic_scale[None, :, :] * hebb      # (B,OUT,IN)
    out = jnp.einsum('bi,boi->bo', x, w_eff)                           # (B,OUT)
    uin = x[:, None, :]
    uout = out[:, :, None]
    hebb_new = hebb + plastic_lr * uout * (uin - uout * hebb)
    out = out + bias
    return out, hebb_new


def _make_params(key, IN, OUT, dtype):
    # Mimics PlasticLinear.reset_parameters (single_plastic_lr=False,
    # initial_plastic_lr=0.1, bias=True).
    k_w, k_s, k_lr, k_b = jax.random.split(key, 4)
    stdv = 1.0 / math.sqrt(IN)
    weight = jax.random.uniform(k_w, (OUT, IN), dtype, minval=-stdv, maxval=stdv)
    plastic_scale = jax.random.uniform(k_s, (OUT, IN), dtype, minval=-stdv, maxval=stdv)
    plastic_lr = jax.random.uniform(k_lr, (OUT, IN), dtype, minval=1e-6, maxval=0.1)
    bias = jax.random.uniform(k_b, (OUT,), dtype, minval=-stdv, maxval=stdv)
    return weight, plastic_scale, plastic_lr, bias


if __name__ == "__main__":
    key = jax.random.PRNGKey(0)
    k1, k2 = jax.random.split(key)

    # ---- Test 1: small f32 problem (exact path, fused VPU branch) ----------
    B, IN, OUT = 8, 32, 32
    kp, kx, kh = jax.random.split(k1, 3)
    weight, plastic_scale, plastic_lr, bias = _make_params(kp, IN, OUT, jnp.float32)
    x = jax.random.normal(kx, (B, IN), jnp.float32)
    hebb = 0.1 * jax.random.normal(kh, (B, OUT, IN), jnp.float32)

    # Compute the reference first: the kernel aliases hebb -> hebb_new.
    out_ref, hebb_ref = plastic_linear_reference(
        x, hebb, weight, plastic_scale, plastic_lr, bias)
    jax.block_until_ready((out_ref, hebb_ref))

    out, hebb_new = plastic_linear(x, hebb, weight, plastic_scale, plastic_lr, bias)
    jax.block_until_ready((out, hebb_new))
    assert out.shape == (B, OUT) and hebb_new.shape == (B, OUT, IN)
    assert jnp.allclose(out, out_ref, atol=1e-4, rtol=1e-4)
    assert jnp.allclose(hebb_new, hebb_ref, atol=1e-4, rtol=1e-4)

    # ---- Test 2: bf16 hebb (recommended storage), multi-step grid + MXU ----
    B2, IN2, OUT2 = 256, 128, 128
    kp2, kx2, kh2 = jax.random.split(k2, 3)
    w2, s2, lr2, b2 = _make_params(kp2, IN2, OUT2, jnp.float32)
    x2 = jax.random.normal(kx2, (B2, IN2), jnp.float32)
    hebb2 = (0.1 * jax.random.normal(kh2, (B2, OUT2, IN2), jnp.float32)
             ).astype(jnp.bfloat16)

    out2_ref, hebb2_ref = plastic_linear_reference(
        x2, hebb2.astype(jnp.float32), w2, s2, lr2, b2)
    jax.block_until_ready((out2_ref, hebb2_ref))

    out2, hebb2_new = plastic_linear(x2, hebb2, w2, s2, lr2, b2)
    jax.block_until_ready((out2, hebb2_new))
    assert out2.shape == (B2, OUT2) and hebb2_new.shape == (B2, OUT2, IN2)
    assert hebb2_new.dtype == hebb2.dtype
    assert jnp.allclose(out2, out2_ref, atol=2e-2, rtol=2e-2)
    assert jnp.allclose(hebb2_new.astype(jnp.float32), hebb2_ref,
                        atol=2e-2, rtol=2e-2)

    print("KERNEL_OK")
</pallas_src>

<mosaic_0001>
module attributes {stable_mosaic.version = 11 : i64} {
  func.func @plastic_linear_kernel(%arg0: i32, %arg1: i32, %arg2: memref<8x32xf32, #tpu.memory_space<vmem>>, %arg3: memref<8x32x32xf32, #tpu.memory_space<vmem>>, %arg4: memref<32x32xf32, #tpu.memory_space<vmem>>, %arg5: memref<32x32xf32, #tpu.memory_space<vmem>>, %arg6: memref<32x32xf32, #tpu.memory_space<vmem>>, %arg7: memref<1x32xf32, #tpu.memory_space<vmem>>, %arg8: memref<8x32xf32, #tpu.memory_space<vmem>>, %arg9: memref<8x32x32xf32, #tpu.memory_space<vmem>>) attributes {dimension_semantics = [#tpu.dimension_semantics<parallel>, #tpu.dimension_semantics<parallel>], iteration_bounds = array<i64: 1, 1>, scalar_prefetch = 0 : i64, scratch_operands = 0 : i64, tpu.core_type = #tpu.core_type<tc>, window_params = [{transform_indices = @transform_0, window_bounds = array<i64: 8, 32>}, {transform_indices = @transform_1, window_bounds = array<i64: 8, 32, 32>}, {transform_indices = @transform_2, window_bounds = array<i64: 32, 32>}, {transform_indices = @transform_3, window_bounds = array<i64: 32, 32>}, {transform_indices = @transform_4, window_bounds = array<i64: 32, 32>}, {transform_indices = @transform_5, window_bounds = array<i64: 1, 32>}, {transform_indices = @transform_6, window_bounds = array<i64: 8, 32>}, {transform_indices = @transform_7, window_bounds = array<i64: 8, 32, 32>}]} {
    %c0 = arith.constant 0 : index
    %c0_0 = arith.constant 0 : index
    %0 = vector.load %arg2[%c0, %c0_0] : memref<8x32xf32, #tpu.memory_space<vmem>>, vector<8x32xf32>
    %c0_1 = arith.constant 0 : index
    %c0_2 = arith.constant 0 : index
    %c0_3 = arith.constant 0 : index
    %1 = vector.load %arg3[%c0_1, %c0_2, %c0_3] : memref<8x32x32xf32, #tpu.memory_space<vmem>>, vector<8x32x32xf32>
    %c0_4 = arith.constant 0 : index
    %c0_5 = arith.constant 0 : index
    %2 = vector.load %arg5[%c0_4, %c0_5] : memref<32x32xf32, #tpu.memory_space<vmem>>, vector<32x32xf32>
    %c0_6 = arith.constant 0 : index
    %c0_7 = arith.constant 0 : index
    %3 = vector.load %arg6[%c0_6, %c0_7] : memref<32x32xf32, #tpu.memory_space<vmem>>, vector<32x32xf32>
    %c0_8 = arith.constant 0 : index
    %c0_9 = arith.constant 0 : index
    %4 = vector.load %arg7[%c0_8, %c0_9] : memref<1x32xf32, #tpu.memory_space<vmem>>, vector<1x32xf32>
    %5 = vector.shape_cast %0 : vector<8x32xf32> to vector<8x1x32xf32>
    %c0_10 = arith.constant 0 : index
    %c0_11 = arith.constant 0 : index
    %6 = vector.load %arg4[%c0_10, %c0_11] : memref<32x32xf32, #tpu.memory_space<vmem>>, vector<32x32xf32>
    %7 = vector.shape_cast %6 : vector<32x32xf32> to vector<1x32x32xf32>
    %8 = vector.shape_cast %2 : vector<32x32xf32> to vector<1x32x32xf32>
    %9 = vector.broadcast %8 : vector<1x32x32xf32> to vector<8x32x32xf32>
    %10 = arith.mulf %9, %1 : vector<8x32x32xf32>
    %11 = vector.broadcast %7 : vector<1x32x32xf32> to vector<8x32x32xf32>
    %12 = arith.addf %11, %10 : vector<8x32x32xf32>
    %13 = vector.broadcast %5 : vector<8x1x32xf32> to vector<8x32x32xf32>
    %14 = arith.mulf %13, %12 : vector<8x32x32xf32>
    %cst = arith.constant dense<0.000000e+00> : vector<8x32xf32>
    %15 = vector.multi_reduction <add>, %14, %cst [2] : vector<8x32x32xf32> to vector<8x32xf32>
    %16 = vector.shape_cast %15 : vector<8x32xf32> to vector<8x32x1xf32>
    %17 = vector.shape_cast %3 : vector<32x32xf32> to vector<1x32x32xf32>
    %18 = vector.broadcast %17 : vector<1x32x32xf32> to vector<8x32x32xf32>
    %19 = vector.broadcast %16 : vector<8x32x1xf32> to vector<8x32x32xf32>
    %20 = arith.mulf %18, %19 : vector<8x32x32xf32>
    %21 = vector.broadcast %16 : vector<8x32x1xf32> to vector<8x32x32xf32>
    %22 = arith.mulf %21, %1 : vector<8x32x32xf32>
    %23 = vector.broadcast %5 : vector<8x1x32xf32> to vector<8x32x32xf32>
    %24 = arith.subf %23, %22 : vector<8x32x32xf32>
    %25 = arith.mulf %20, %24 : vector<8x32x32xf32>
    %26 = arith.addf %1, %25 : vector<8x32x32xf32>
    %c0_12 = arith.constant 0 : index
    %c0_13 = arith.constant 0 : index
    %c0_14 = arith.constant 0 : index
    %27 = vector.load %arg9[%c0_12, %c0_13, %c0_14] : memref<8x32x32xf32, #tpu.memory_space<vmem>>, vector<8x32x32xf32>
    tpu.vector_store %arg9[%c0_12, %c0_13, %c0_14], %26 {strides = array<i32>} : memref<8x32x32xf32, #tpu.memory_space<vmem>>, vector<8x32x32xf32>,
    %28 = vector.broadcast %4 : vector<1x32xf32> to vector<8x32xf32>
    %29 = arith.addf %15, %28 : vector<8x32xf32>
    %c0_15 = arith.constant 0 : index
    %c0_16 = arith.constant 0 : index
    %30 = vector.load %arg8[%c0_15, %c0_16] : memref<8x32xf32, #tpu.memory_space<vmem>>, vector<8x32xf32>
    tpu.vector_store %arg8[%c0_15, %c0_16], %29 {strides = array<i32>} : memref<8x32xf32, #tpu.memory_space<vmem>>, vector<8x32xf32>,
    return
  }
  func.func @transform_0(%arg0: i32, %arg1: i32) -> (i32, i32) {
    %c0_i32 = arith.constant 0 : i32
    %c0_i32_0 = arith.constant 0 : i32
    return %arg1, %c0_i32 : i32, i32
  }
  func.func @transform_1(%arg0: i32, %arg1: i32) -> (i32, i32, i32) {
    %c0_i32 = arith.constant 0 : i32
    %c0_i32_0 = arith.constant 0 : i32
    return %arg1, %arg0, %c0_i32 : i32, i32, i32
  }
  func.func @transform_2(%arg0: i32, %arg1: i32) -> (i32, i32) {
    %c0_i32 = arith.constant 0 : i32
    %c0_i32_0 = arith.constant 0 : i32
    return %arg0, %c0_i32 : i32, i32
  }
  func.func @transform_3(%arg0: i32, %arg1: i32) -> (i32, i32) {
    %c0_i32 = arith.constant 0 : i32
    %c0_i32_0 = arith.constant 0 : i32
    return %arg0, %c0_i32 : i32, i32
  }
  func.func @transform_4(%arg0: i32, %arg1: i32) -> (i32, i32) {
    %c0_i32 = arith.constant 0 : i32
    %c0_i32_0 = arith.constant 0 : i32
    return %arg0, %c0_i32 : i32, i32
  }
  func.func @transform_5(%arg0: i32, %arg1: i32) -> (i32, i32) {
    %c0_i32 = arith.constant 0 : i32
    %c0_i32_0 = arith.constant 0 : i32
    return %c0_i32, %arg0 : i32, i32
  }
  func.func @transform_6(%arg0: i32, %arg1: i32) -> (i32, i32) {
    %c0_i32 = arith.constant 0 : i32
    return %arg1, %arg0 : i32, i32
  }
  func.func @transform_7(%arg0: i32, %arg1: i32) -> (i32, i32, i32) {
    %c0_i32 = arith.constant 0 : i32
    %c0_i32_0 = arith.constant 0 : i32
    return %arg1, %arg0, %c0_i32 : i32, i32, i32
  }
}

</mosaic_0001>

<bundles_post_ra>
// kernel: tpu_custom_call.1
= control target key start
LH: loop header
LB: loop body
LE: loop exit
PB: predicated region body
PF: predicated region fallthrough
CT: control target
= control target key end

     0   :  { %13 = vsyncpa [#allocation3], 0  ;;  %s1672_s0 = inlined_call_operand.vmem [shape: f32[8,32], index: 0, kind: input, shape index: {}]   ;;  %s1673_s1 = inlined_call_operand.hbm [shape: f32[8,32,32], index: 1, kind: input, shape index: {}, may-alias: {1,7}]   ;;  %s1674_s2 = inlined_call_operand.vmem [shape: f32[32,32], index: 2, kind: input, shape index: {}]   ;;  %s1675_s3 = inlined_call_operand.vmem [shape: f32[32,32], index: 3, kind: input, shape index: {}]   ;;  %s1676_s4 = inlined_call_operand.vmem [shape: f32[32,32], index: 4, kind: input, shape index: {}]   ;;  %s1677_s5 = inlined_call_operand.vmem [shape: f32[1,32], index: 5, kind: input, shape index: {}]   ;;  %s1678_s6 = inlined_call_operand.hbm [shape: f32[8,32], index: 6, kind: output, shape index: {0}]   ;;  %s1679_s7 = inlined_call_operand.hbm [shape: f32[8,32,32], index: 7, kind: output, shape index: {1}, may-alias: {1,7}]  }
   0x1   :  { %14 = vsyncpa [#allocation4], 0 }
   0x2   :  { %15 = vsyncpa [#allocation7], 0  ;;  %s22_s26 = sshll.u32 %s1673_s1, 4  ;;  %s895_s27 = smov [#allocation2]   ;;  %s23_s26 = int_to_ptr.hbm [resolvable:$true] %s22_s26 }
   0x3   :  { %s24_s28 = sshll.u32 %s895_s27, 4  ;;  %s896_s29 = smov 128   ;;  %s25_s28 = int_to_ptr.vmem [resolvable:$true] %s24_s28 }
   0x4   :  { %s897_s30 = smov 8  }
   0x5   :  { %30 = dma.hbm_to_vmem [thread:$0]  %s23_s26, 4096, %s25_s28, [#allocation3], %s896_s29, %s896_s29, %s897_s30  }
   0x6   :  { %889 = dma.done.wait [#allocation3], 4096  }
   0x7   :  { %890 = vsyncadd [#allocation3], 4294963200  ;;  %v950_v0 = vld [vmem:[%s1672_s0] sm:$0xff]  ;;  %v952_v1 = vld [vmem:[#allocation2 + $0x10] sm:$0xff]  ;;  %vm209_vm0 = vcmask 261120   ;;  %s785_s12 = sshll.u32 %s1679_s7, 4  ;;  %s786_s12 = int_to_ptr.hbm [resolvable:$true] %s785_s12 }
   0x8   :  { %v957_v2 = vld [vmem:[%s1675_s3 + $0x10] sm:$0xff]  ;;  %v967_v5 = vperm.slane %v950_v0, 0  ;;  %v969_v6 = vld [vmem:[#allocation2] sm:$0xff]  ;;  %v86_v8 = vrot.slane %v950_v0, 1  ;;  %v986_v12 = vld [vmem:[#allocation2 + $0x18] sm:$0xff]  ;;  %v87_v44 = vrot.slane %v950_v0, 2 }
   0x9   :  { %v962_v3 = vld [vmem:[%s1674_s2 + $0x10] sm:$0xff]  ;;  %v99_v4 = vmul.f32 %v957_v2, %v952_v1  ;;  %v974_v7 = vld [vmem:[%s1675_s3] sm:$0xff]  ;;  %v996_v16 = vld [vmem:[%s1675_s3 + $0x18] sm:$0xff]  ;;  %vm693_vm1 = vcmask 130112   ;;  %vm697_vm2 = vcmask 195712   ;;  %vm701_vm3 = vcmask 261312  }
   0xa   :  { %v980_v9 = vld [vmem:[%s1674_s2] sm:$0xff]  ;;  %v97_v10 = vmul.f32 %v974_v7, %v969_v6  ;;  %v991_v15 = vperm.slane %v86_v8, 0  ;;  %v1001_v17 = vld [vmem:[%s1674_s2 + $0x18] sm:$0xff]  ;;  %v1003_v18 = vld [vmem:[#allocation2 + $0x8] sm:$0xff]  ;;  %v100_v20 = vmul.f32 %v996_v16, %v986_v12  ;;  %v1058_v53 = vperm.slane %v87_v44, 0  ;;  %s900_s7 = smov [#allocation5]  }
   0xb   :  { %v984_v11 = vld [vmem:[#allocation2 + $0x20] sm:$0xff]  ;;  %v131_v13 = vadd.f32 %v99_v4, %v962_v3  ;;  %v1011_v21 = vld [vmem:[%s1675_s3 + $0x8] sm:$0xff]  ;;  %v1028_v30 = vld [vmem:[#allocation2 + $0x38] sm:$0xff]  ;;  %vm752_vm4 = vcmask 1041409   ;;  %vm754_vm5 = vcmask 1042434   ;;  %vm756_vm6 = vcmask 1043459  }
   0xc   :  { %v101_v14 = vmul.f32 %v974_v7, %v984_v11  ;;  %v129_v19 = vadd.f32 %v97_v10, %v980_v9  ;;  %v1016_v22 = vld [vmem:[%s1674_s2 + $0x8] sm:$0xff]  ;;  %v98_v26 = vmul.f32 %v1011_v21, %v1003_v18  ;;  %v132_v29 = vadd.f32 %v100_v20, %v1001_v17  ;;  %v1034_v35 = vld [vmem:[#allocation2 + $0x30] sm:$0xff]  ;;  %v1037_v37 = vld [vmem:[#allocation2 + $0x40] sm:$0xff]  ;;  %s775_s13 = sshll.u32 %s1678_s6, 4  ;;  %s776_s13 = int_to_ptr.hbm [resolvable:$true] %s775_s13 }
   0xd   :  { %v1018_v23 = vld [vmem:[#allocation2 + $0x28] sm:$0xff]  ;;  %v179_v24 = vmul.f32 %v967_v5, %v131_v13  ;;  %v104_v40 = vmul.f32 %v996_v16, %v1028_v30  ;;  %v103_v42 = vmul.f32 %v957_v2, %v1034_v35  ;;  %v105_v45 = vmul.f32 %v974_v7, %v1037_v37  ;;  %v1054_v50 = vld [vmem:[#allocation2 + $0x50] sm:$0xff]  ;;  %v1062_v55 = vld [vmem:[#allocation2 + $0x58] sm:$0xff] }
   0xe   :  { %v133_v25 = vadd.f32 %v101_v14, %v980_v9  ;;  %v102_v27 = vmul.f32 %v1011_v21, %v1018_v23  ;;  %v177_v28 = vmul.f32 %v967_v5, %v129_v19  ;;  %v130_v33 = vadd.f32 %v98_v26, %v1016_v22  ;;  %v1060_v54 = vld [vmem:[#allocation2 + $0x48] sm:$0xff]  ;;  %v1081_v19 = vld [vmem:[#allocation2 + $0x60] sm:$0xff]  ;;  %v1083_v20 = vld [vmem:[#allocation2 + $0x70] sm:$0xff] }
   0xf   :  { %v216_v31 = vsel %vm209_vm0, %v179_v24, 0.0  ;;  %v180_v39 = vmul.f32 %v967_v5, %v132_v29  ;;  %v136_v47 = vadd.f32 %v104_v40, %v1001_v17  ;;  %v135_v49 = vadd.f32 %v103_v42, %v962_v3  ;;  %v1077_v10 = vld [vmem:[#allocation2 + $0x68] sm:$0xff]  ;;  %v1105_v42 = vld [vmem:[#allocation2 + $0x78] sm:$0xff] }
  0x10   :  { %v181_v32 = vmul.f32 %v991_v15, %v133_v25  ;;  %v134_v34 = vadd.f32 %v102_v27, %v1016_v22  ;;  %217 = vadd.xlane.f32.xlu1 %v216_v31  ;;  %v210_v36 = vsel %vm209_vm0, %v177_v28, 0.0  ;;  %v178_v41 = vmul.f32 %v967_v5, %v130_v33  ;;  %v1108_v44 = vld [vmem:[#allocation2 + $0x88] sm:$0xff] }
  0x11   :  { %211 = vadd.xlane.f32.xlu0 %v210_v36  ;;  %v219_v46 = vsel %vm209_vm0, %v180_v39, 0.0  ;;  %v137_v52 = vadd.f32 %v105_v45, %v980_v9  ;;  %v184_v56 = vmul.f32 %v991_v15, %v136_v47  ;;  %v107_v57 = vmul.f32 %v957_v2, %v1054_v50  ;;  %v1101_v39 = vld [vmem:[#allocation2 + $0x80] sm:$0xff] }
  0x12   :  { %v222_v38 = vsel %vm209_vm0, %v181_v32, 0.0  ;;  %v182_v43 = vmul.f32 %v991_v15, %v134_v34  ;;  %v213_v48 = vsel %vm209_vm0, %v178_v41, 0.0  ;;  %v183_v58 = vmul.f32 %v991_v15, %v135_v49  ;;  %v1116_v49 = vld [vmem:[#allocation2 + $0xc0] sm:$0xff] }
  0x13   :  { %223 = vadd.xlane.f32.xlu2 %v222_v38  ;;  %v106_v59 = vmul.f32 %v1011_v21, %v1060_v54  ;;  %v185_v60 = vmul.f32 %v1058_v53, %v137_v52  ;;  %v108_v61 = vmul.f32 %v996_v16, %v1062_v55  ;;  %v231_v62 = vsel %vm209_vm0, %v184_v56, 0.0 }
  0x14   :  { %v225_v51 = vsel %vm209_vm0, %v182_v43, 0.0  ;;  %v139_v63 = vadd.f32 %v107_v57, %v962_v3  ;;  %v228_v4 = vsel %vm209_vm0, %v183_v58, 0.0  ;;  %v88_v25 = vrot.slane %v950_v0, 3 }
  0x15   :  { %v138_v8 = vadd.f32 %v106_v59, %v1016_v22  ;;  %v234_v13 = vsel %vm209_vm0, %v185_v60, 0.0  ;;  %v140_v14 = vadd.f32 %v108_v61, %v1001_v17  ;;  %v110_v26 = vmul.f32 %v1011_v21, %v1077_v10 }
  0x16   :  { %v187_v24 = vmul.f32 %v1058_v53, %v139_v63  ;;  %v109_v28 = vmul.f32 %v974_v7, %v1081_v19  ;;  %v111_v31 = vmul.f32 %v957_v2, %v1083_v20  ;;  %v1097_v34 = vperm.slane %v88_v25, 0  ;;  %v1143_v25 = vld [vmem:[#allocation2 + $0x90] sm:$0xff] }
  0x17   :  { %v186_v27 = vmul.f32 %v1058_v53, %v138_v8  ;;  %v188_v29 = vmul.f32 %v1058_v53, %v140_v14  ;;  %v142_v33 = vadd.f32 %v110_v26, %v1016_v22  ;;  %v89_v43 = vrot.slane %v950_v0, 4  ;;  %v1145_v26 = vld [vmem:[#allocation2 + $0xa0] sm:$0xff] }
  0x18   :  { %220 = vadd.xlane.f32.xlu1 %v219_v46  ;;  %v240_v32 = vsel %vm209_vm0, %v187_v24, 0.0  ;;  %v141_v38 = vadd.f32 %v109_v28, %v980_v9  ;;  %v143_v41 = vadd.f32 %v111_v31, %v962_v3  ;;  %v113_v46 = vmul.f32 %v974_v7, %v1101_v39 }
  0x19   :  { %214 = vadd.xlane.f32.xlu0 %v213_v48  ;;  %v237_v36 = vsel %vm209_vm0, %v186_v27, 0.0  ;;  %v243_v40 = vsel %vm209_vm0, %v188_v29, 0.0  ;;  %v190_v45 = vmul.f32 %v1097_v34, %v142_v33  ;;  %v112_v48 = vmul.f32 %v996_v16, %v1105_v42 }
  0x1a   :  { %v189_v47 = vmul.f32 %v1097_v34, %v141_v38  ;;  %v191_v52 = vmul.f32 %v1097_v34, %v143_v41  ;;  %v114_v56 = vmul.f32 %v1011_v21, %v1108_v44  ;;  %v121_v57 = vmul.f32 %v974_v7, %v1116_v49  ;;  %v1158_v38 = vld [vmem:[#allocation2 + $0xd8] sm:$0xff] }
  0x1b   :  { %226 = vadd.xlane.f32.xlu2 %v225_v51  ;;  %v1118_v51 = vld [vmem:[#allocation2 + $0xd0] sm:$0xff]  ;;  %v1127_v59 = vperm.slane %v89_v43, 0  ;;  %v249_v60 = vsel %vm209_vm0, %v190_v45, 0.0  ;;  %v145_v61 = vadd.f32 %v113_v46, %v980_v9  ;;  %v115_v31 = vmul.f32 %v957_v2, %v1143_v25 }
  0x1c   :  { %v123_v58 = vmul.f32 %v957_v2, %v1118_v51  ;;  %v1134_v63 = vadd.f32 %v121_v57, %v980_v9  ;;  %v246_v8 = vsel %vm209_vm0, %v189_v47, 0.0  ;;  %v252_v14 = vsel %vm209_vm0, %v191_v52, 0.0  ;;  %v1171_v52 = vld [vmem:[#allocation2 + $0xb0] sm:$0xff] }
  0x1d   :  { %v146_v24 = vadd.f32 %v114_v56, %v1016_v22  ;;  %v193_v28 = vmul.f32 %v1127_v59, %v145_v61  ;;  %v117_v33 = vmul.f32 %v974_v7, %v1145_v26  ;;  %v124_v45 = vmul.f32 %v996_v16, %v1158_v38 }
  0x1e   :  { %vm758_vm7 = vcmask 1044484   ;;  %vm760_vm8 = vcmask 1045509   ;;  %vm762_vm9 = vcmask 1046534   ;;  %vm764_vm10 = vcmask 1047559  }
  0x1f   :  { %v194_v41 = vmul.f32 %v1127_v59, %v146_v24  ;;  %v1177_v57 = vadd.f32 %v124_v45, %v1001_v17  ;;  %v119_v24 = vmul.f32 %v957_v2, %v1171_v52 }
  0x20   :  { %232 = vadd.xlane.f32.xlu1 %v231_v62  ;;  %v1131_v62 = vld [vmem:[#allocation2 + $0x98] sm:$0xff] }
  0x21   :  { %229 = vadd.xlane.f32.xlu0 %v228_v4  ;;  %v1137_v4 = vadd.f32 %v123_v58, %v962_v3  ;;  %v116_v27 = vmul.f32 %v996_v16, %v1131_v62  ;;  %v261_v61 = vsel %vm209_vm0, %v194_v41, 0.0 }
  0x23   :  { %235 = vadd.xlane.f32.xlu2 %v234_v13  ;;  %v144_v13 = vadd.f32 %v112_v48, %v1001_v17  ;;  %v148_v47 = vadd.f32 %v116_v27, %v1001_v17  ;;  %v258_v48 = vsel %vm209_vm0, %v193_v28, 0.0  ;;  %v1192_v27 = vld [vmem:[#allocation2 + $0xb8] sm:$0xff] }
  0x24   :  { %v120_v41 = vmul.f32 %v996_v16, %v1192_v27 }
  0x25   :  { %v192_v29 = vmul.f32 %v1097_v34, %v144_v13  ;;  %v196_v28 = vmul.f32 %v1127_v59, %v148_v47 }
  0x27   :  { %v255_v58 = vsel %vm209_vm0, %v192_v29, 0.0  ;;  %v267_v47 = vsel %vm209_vm0, %v196_v28, 0.0 }
  0x28   :  { %241 = vadd.xlane.f32.xlu1 %v240_v32  ;;  %v90_v32 = vrot.slane %v950_v0, 5 }
  0x29   :  { %238 = vadd.xlane.f32.xlu0 %v237_v36  ;;  %v1156_v36 = vld [vmem:[#allocation2 + $0xe0] sm:$0xff] }
  0x2a   :  { %v125_v43 = vmul.f32 %v974_v7, %v1156_v36  ;;  %v1186_v13 = vperm.slane %v90_v32, 0  ;;  %v1200_v32 = vld [vmem:[#allocation2 + $0xf0] sm:$0xff] }
  0x2b   :  { %244 = vadd.xlane.f32.xlu2 %v243_v40  ;;  %v1160_v40 = vld [vmem:[#allocation2 + $0xe8] sm:$0xff]  ;;  %v127_v45 = vmul.f32 %v957_v2, %v1200_v32 }
  0x2c   :  { %1682 = vst [vmem:[#allocation11_spill] sm:$0xff] %v1160_v40  ;;  %v126_v46 = vmul.f32 %v1011_v21, %v1160_v40  ;;  %v1174_v56 = vadd.f32 %v125_v43, %v980_v9 }
  0x2e   :  { %v1180_v7 = vadd.f32 %v126_v46, %v1016_v22  ;;  %v151_v46 = vadd.f32 %v119_v24, %v962_v3  ;;  %v91_v24 = vrot.slane %v950_v0, 6 }
  0x30   :  { %250 = vadd.xlane.f32.xlu1 %v249_v60  ;;  %v147_v60 = vadd.f32 %v115_v31, %v962_v3  ;;  %v199_v2 = vmul.f32 %v1186_v13, %v151_v46 }
  0x31   :  { %247 = vadd.xlane.f32.xlu0 %v246_v8  ;;  %v149_v8 = vadd.f32 %v117_v33, %v980_v9  ;;  %v1198_v9 = vld [vmem:[#allocation2 + $0xf8] sm:$0xff] }
  0x32   :  { %v195_v29 = vmul.f32 %v1127_v59, %v147_v60  ;;  %v128_v43 = vmul.f32 %v996_v16, %v1198_v9  ;;  %v152_v16 = vadd.f32 %v120_v41, %v1001_v17  ;;  %v1228_v41 = vperm.slane %v91_v24, 0 }
  0x33   :  { %253 = vadd.xlane.f32.xlu2 %v252_v14  ;;  %v1188_v14 = vld [vmem:[#allocation2 + $0xa8] sm:$0xff]  ;;  %v197_v33 = vmul.f32 %v1186_v13, %v149_v8 }
  0x34   :  { %v118_v31 = vmul.f32 %v1011_v21, %v1188_v14  ;;  %v264_v60 = vsel %vm209_vm0, %v195_v29, 0.0  ;;  %v1215_v8 = vld [vmem:[#allocation2 + $0xc8] sm:$0xff] }
  0x35   :  { %v270_v40 = vsel %vm209_vm0, %v197_v33, 0.0  ;;  %v122_v28 = vmul.f32 %v1011_v21, %v1215_v8  ;;  %v276_v33 = vsel %vm209_vm0, %v199_v2, 0.0 }
  0x38   :  { %259 = vadd.xlane.f32.xlu1 %v258_v48  ;;  %v160_v48 = vadd.f32 %v128_v43, %v1001_v17  ;;  %v154_v17 = vadd.f32 %v122_v28, %v1016_v22 }
  0x39   :  { %256 = vadd.xlane.f32.xlu0 %v255_v58  ;;  %v159_v58 = vadd.f32 %v127_v45, %v962_v3  ;;  %v500_v3 = vlaneseq }
  0x3b   :  { %262 = vadd.xlane.f32.xlu2 %v261_v61  ;;  %v150_v61 = vadd.f32 %v118_v31, %v1016_v22  ;;  %v200_v31 = vmul.f32 %v1186_v13, %v152_v16  ;;  %v501_v43 = vshrl.u32 %v500_v3, 7  ;;  %v201_v22 = vmul.f32 %v1228_v41, %v1134_v63 }
  0x3c   :  { %v204_v63 = vmul.f32 %v1228_v41, %v1177_v57 }
  0x3d   :  { %v198_v29 = vmul.f32 %v1186_v13, %v150_v61  ;;  %809 = vset.pattern.permute.xlu2 %v501_v43  ;;  %v508_v45 = vadd.s32 8, %v501_v43  ;;  %v514_v46 = vadd.s32 16, %v501_v43  ;;  %v279_v21 = vsel %vm209_vm0, %v200_v31, 0.0 }
  0x3e   :  { %v203_v61 = vmul.f32 %v1228_v41, %v1137_v4  ;;  %v282_v24 = vsel %vm209_vm0, %v201_v22, 0.0  ;;  %v291_v31 = vsel %vm209_vm0, %v204_v63, 0.0 }
  0x3f   :  { %810 = vset.pattern.permute.xlu0 %v508_v45  ;;  %811 = vset.pattern.permute.xlu1 %v514_v46  ;;  %v520_v46 = vadd.s32 24, %v501_v43 }
  0x40   :  { %268 = vadd.xlane.f32.xlu1 %v267_v47  ;;  %v273_v47 = vsel %vm209_vm0, %v198_v29, 0.0  ;;  %v288_v28 = vsel %vm209_vm0, %v203_v61, 0.0 }
  0x41   :  { %265 = vadd.xlane.f32.xlu0 %v264_v60  ;;  %v92_v60 = vrot.slane %v950_v0, 7 }
  0x43   :  { %271 = vadd.xlane.f32.xlu2 %v270_v40  ;;  %v202_v40 = vmul.f32 %v1228_v41, %v154_v17  ;;  %v1239_v2 = vperm.slane %v92_v60, 0 }
  0x45   :  { %v285_v16 = vsel %vm209_vm0, %v202_v40, 0.0  ;;  %v205_v0 = vmul.f32 %v1239_v2, %v1174_v56  ;;  %v206_v4 = vmul.f32 %v1239_v2, %v1180_v7  ;;  %v208_v17 = vmul.f32 %v1239_v2, %v160_v48  ;;  %v816_v7 = vld [vmem:[%s1677_s5] ss:$0 sm:$0xff]  ;;  %v1262_v48 = vld [vmem:[%s1676_s4 + $0x10] sm:$0xff] }
  0x46   :  { %v207_v56 = vmul.f32 %v1239_v2, %v159_v58 }
  0x47   :  { %v294_v29 = vsel %vm209_vm0, %v205_v0, 0.0  ;;  %v303_v45 = vsel %vm209_vm0, %v208_v17, 0.0 }
  0x48   :  { %277 = vadd.xlane.f32.xlu1 %v276_v33  ;;  %v297_v33 = vsel %vm209_vm0, %v206_v4, 0.0  ;;  %v300_v57 = vsel %vm209_vm0, %v207_v56, 0.0 }
  0x49   :  { %274 = vadd.xlane.f32.xlu0 %v273_v47  ;;  %v1269_v47 = vld [vmem:[%s1676_s4] sm:$0xff] }
  0x4b   :  { %280 = vadd.xlane.f32.xlu2 %v279_v21 }
  0x50   :  { %286 = vadd.xlane.f32.xlu1 %v285_v16 }
  0x51   :  { %283 = vadd.xlane.f32.xlu0 %v282_v24 }
  0x53   :  { %289 = vadd.xlane.f32.xlu2 %v288_v28 }
  0x58   :  { %295 = vadd.xlane.f32.xlu1 %v294_v29 }
  0x59   :  { %292 = vadd.xlane.f32.xlu0 %v291_v31  ;;  %v1293_v31 = vld [vmem:[%s1676_s4 + $0x18] sm:$0xff] }
  0x5b   :  { %298 = vadd.xlane.f32.xlu2 %v297_v33 }
  0x60   :  { %304 = vadd.xlane.f32.xlu1 %v303_v45 }
  0x61   :  { %301 = vadd.xlane.f32.xlu0 %v300_v57 }
  0x73   :  { %504 = vperm.xlu2 %809, %v816_v7  }
  0x75   :  { %510 = vperm.xlu0 %810, %v816_v7  }
  0x79   :  { %516 = vperm.xlu1 %811, %v816_v7  }
  0x7b   :  { %812 = vset.pattern.permute.xlu2 %v520_v46 }
  0x83   :  { %522 = vperm.xlu2 %812, %v816_v7   ;;  %v1264_v58 = vpop.xlane.xlu1 %217  ;;  %v1303_v7 = vld [vmem:[%s1676_s4 + $0x8] sm:$0xff]  ;;  %s899_s4 = smov [#allocation6]  }
  0x84   :  { %v1271_v21 = vpop.xlane.xlu0 %211  ;;  %v308_v43 = vmul.f32 %v1264_v58, %v1262_v48  ;;  %v340_v40 = vmul.f32 %v1264_v58, %v952_v1  ;;  %s783_s1 = sshll.u32 %s899_s4, 4  ;;  %s784_s1 = int_to_ptr.vmem [resolvable:$true] %s783_s1 }
  0x85   :  { %v338_v60 = vmul.f32 %v1271_v21, %v969_v6  ;;  %v306_v28 = vmul.f32 %v1271_v21, %v1269_v47 }
  0x86   :  { %v1279_v22 = vpop.xlane.xlu2 %223  ;;  %v372_v24 = vsub.f32 %v967_v5, %v340_v40 }
  0x87   :  { %v310_v61 = vmul.f32 %v1279_v22, %v1269_v47  ;;  %v342_v16 = vmul.f32 %v1279_v22, %v984_v11  ;;  %v370_v0 = vsub.f32 %v967_v5, %v338_v60 }
  0x88   :  { %v404_v4 = vmul.f32 %v372_v24, %v308_v43 }
  0x89   :  { %v374_v63 = vsub.f32 %v991_v15, %v342_v16  ;;  %v402_v29 = vmul.f32 %v370_v0, %v306_v28 }
  0x8a   :  { %v436_v17 = vadd.f32 %v404_v4, %v952_v1 }
  0x8b   :  { %v406_v33 = vmul.f32 %v374_v63, %v310_v61  ;;  %v434_v56 = vadd.f32 %v402_v29, %v969_v6  ;;  %v1297_v45 = vpop.xlane.xlu1 %220 }
  0x8c   :  { %v1305_v46 = vpop.xlane.xlu0 %214  ;;  %468 = vst.msk [vmem:[#allocation6 + $0x10] sm:$0xff] %vm209_vm0, %v436_v17  ;;  %v309_v43 = vmul.f32 %v1297_v45, %v1293_v31  ;;  %v341_v1 = vmul.f32 %v1297_v45, %v986_v12 }
  0x8d   :  { %v438_v57 = vadd.f32 %v406_v33, %v984_v11  ;;  %466 = vst.msk [vmem:[#allocation6] sm:$0xff] %vm209_vm0, %v434_v56  ;;  %v339_v6 = vmul.f32 %v1305_v46, %v1003_v18  ;;  %v307_v16 = vmul.f32 %v1305_v46, %v1303_v7 }
  0x8e   :  { %v1315_v11 = vpop.xlane.xlu2 %226  ;;  %v373_v61 = vsub.f32 %v967_v5, %v341_v1 }
  0x8f   :  { %470 = vst.msk [vmem:[#allocation6 + $0x20] sm:$0xff] %vm209_vm0, %v438_v57  ;;  %v311_v40 = vmul.f32 %v1315_v11, %v1303_v7  ;;  %v343_v60 = vmul.f32 %v1315_v11, %v1018_v23  ;;  %v371_v24 = vsub.f32 %v967_v5, %v339_v6 }
  0x90   :  { %v405_v0 = vmul.f32 %v373_v61, %v309_v43 }
  0x91   :  { %v375_v28 = vsub.f32 %v991_v15, %v343_v60  ;;  %v403_v63 = vmul.f32 %v371_v24, %v307_v16 }
  0x92   :  { %v437_v29 = vadd.f32 %v405_v0, %v986_v12 }
  0x93   :  { %v407_v4 = vmul.f32 %v375_v28, %v311_v40  ;;  %v435_v33 = vadd.f32 %v403_v63, %v1003_v18  ;;  %v1329_v17 = vpop.xlane.xlu1 %232 }
  0x94   :  { %v1332_v57 = vpop.xlane.xlu0 %229  ;;  %469 = vst.msk [vmem:[#allocation6 + $0x18] sm:$0xff] %vm209_vm0, %v437_v29  ;;  %v313_v5 = vmul.f32 %v1329_v17, %v1293_v31  ;;  %v345_v43 = vmul.f32 %v1329_v17, %v1028_v30 }
  0x95   :  { %v439_v56 = vadd.f32 %v407_v4, %v1018_v23  ;;  %467 = vst.msk [vmem:[#allocation6 + $0x8] sm:$0xff] %vm209_vm0, %v435_v33  ;;  %v344_v12 = vmul.f32 %v1332_v57, %v1034_v35  ;;  %v312_v40 = vmul.f32 %v1332_v57, %v1262_v48 }
  0x96   :  { %v1342_v18 = vpop.xlane.xlu2 %235  ;;  %v377_v6 = vsub.f32 %v991_v15, %v345_v43 }
  0x97   :  { %471 = vst.msk [vmem:[#allocation6 + $0x28] sm:$0xff] %vm209_vm0, %v439_v56  ;;  %v314_v23 = vmul.f32 %v1342_v18, %v1269_v47  ;;  %v346_v1 = vmul.f32 %v1342_v18, %v1037_v37  ;;  %v376_v60 = vsub.f32 %v991_v15, %v344_v12 }
  0x98   :  { %v409_v16 = vmul.f32 %v377_v6, %v313_v5 }
  0x99   :  { %v378_v61 = vsub.f32 %v1058_v53, %v346_v1  ;;  %v408_v24 = vmul.f32 %v376_v60, %v312_v40 }
  0x9a   :  { %v441_v0 = vadd.f32 %v409_v16, %v1028_v30 }
  0x9b   :  { %v410_v28 = vmul.f32 %v378_v61, %v314_v23  ;;  %v440_v63 = vadd.f32 %v408_v24, %v1034_v35  ;;  %v1356_v4 = vpop.xlane.xlu1 %241 }
  0x9c   :  { %v1359_v33 = vpop.xlane.xlu0 %238  ;;  %473 = vst.msk [vmem:[#allocation6 + $0x38] sm:$0xff] %vm209_vm0, %v441_v0  ;;  %v316_v15 = vmul.f32 %v1356_v4, %v1262_v48  ;;  %v348_v56 = vmul.f32 %v1356_v4, %v1054_v50 }
  0x9d   :  { %v442_v29 = vadd.f32 %v410_v28, %v1037_v37  ;;  %472 = vst.msk [vmem:[#allocation6 + $0x30] sm:$0xff] %vm209_vm0, %v440_v63  ;;  %v347_v30 = vmul.f32 %v1359_v33, %v1060_v54  ;;  %v315_v12 = vmul.f32 %v1359_v33, %v1303_v7 }
  0x9e   :  { %v1369_v35 = vpop.xlane.xlu2 %244  ;;  %v380_v43 = vsub.f32 %v1058_v53, %v348_v56 }
  0x9f   :  { %474 = vst.msk [vmem:[#allocation6 + $0x40] sm:$0xff] %vm209_vm0, %v442_v29  ;;  %v317_v37 = vmul.f32 %v1369_v35, %v1293_v31  ;;  %v349_v5 = vmul.f32 %v1369_v35, %v1062_v55  ;;  %v379_v23 = vsub.f32 %v1058_v53, %v347_v30 }
  0xa0   :  { %v412_v6 = vmul.f32 %v380_v43, %v316_v15 }
  0xa1   :  { %v381_v1 = vsub.f32 %v1058_v53, %v349_v5  ;;  %v411_v40 = vmul.f32 %v379_v23, %v315_v12 }
  0xa2   :  { %v444_v61 = vadd.f32 %v412_v6, %v1054_v50 }
  0xa3   :  { %v413_v60 = vmul.f32 %v381_v1, %v317_v37  ;;  %v443_v16 = vadd.f32 %v411_v40, %v1060_v54  ;;  %v1383_v24 = vpop.xlane.xlu1 %250 }
  0xa4   :  { %v1386_v0 = vpop.xlane.xlu0 %247  ;;  %476 = vst.msk [vmem:[#allocation6 + $0x50] sm:$0xff] %vm209_vm0, %v444_v61  ;;  %v319_v63 = vmul.f32 %v1383_v24, %v1303_v7  ;;  %v351_v53 = vmul.f32 %v1383_v24, %v1077_v10 }
  0xa5   :  { %v445_v28 = vadd.f32 %v413_v60, %v1062_v55  ;;  %475 = vst.msk [vmem:[#allocation6 + $0x48] sm:$0xff] %vm209_vm0, %v443_v16  ;;  %v350_v50 = vmul.f32 %v1386_v0, %v1081_v19  ;;  %v318_v56 = vmul.f32 %v1386_v0, %v1269_v47 }
  0xa6   :  { %v1396_v54 = vpop.xlane.xlu2 %253  ;;  %v383_v15 = vsub.f32 %v1097_v34, %v351_v53 }
  0xa7   :  { %477 = vst.msk [vmem:[#allocation6 + $0x58] sm:$0xff] %vm209_vm0, %v445_v28  ;;  %v320_v55 = vmul.f32 %v1396_v54, %v1262_v48  ;;  %v352_v29 = vmul.f32 %v1396_v54, %v1083_v20  ;;  %v382_v30 = vsub.f32 %v1097_v34, %v350_v50 }
  0xa8   :  { %v415_v5 = vmul.f32 %v383_v15, %v319_v63 }
  0xa9   :  { %v384_v37 = vsub.f32 %v1097_v34, %v352_v29  ;;  %v414_v43 = vmul.f32 %v382_v30, %v318_v56 }
  0xaa   :  { %v447_v23 = vadd.f32 %v415_v5, %v1077_v10 }
  0xab   :  { %v416_v12 = vmul.f32 %v384_v37, %v320_v55  ;;  %v446_v1 = vadd.f32 %v414_v43, %v1081_v19  ;;  %v1410_v6 = vpop.xlane.xlu1 %259 }
  0xac   :  { %v1413_v60 = vpop.xlane.xlu0 %256  ;;  %479 = vst.msk [vmem:[#allocation6 + $0x68] sm:$0xff] %vm209_vm0, %v447_v23  ;;  %v322_v61 = vmul.f32 %v1410_v6, %v1269_v47  ;;  %v354_v16 = vmul.f32 %v1410_v6, %v1101_v39 }
  0xad   :  { %v448_v40 = vadd.f32 %v416_v12, %v1083_v20  ;;  %478 = vst.msk [vmem:[#allocation6 + $0x60] sm:$0xff] %vm209_vm0, %v446_v1  ;;  %v353_v10 = vmul.f32 %v1413_v60, %v1105_v42  ;;  %v321_v53 = vmul.f32 %v1413_v60, %v1293_v31 }
  0xae   :  { %v1423_v19 = vpop.xlane.xlu2 %262  ;;  %v386_v63 = vsub.f32 %v1127_v59, %v354_v16 }
  0xaf   :  { %480 = vst.msk [vmem:[#allocation6 + $0x70] sm:$0xff] %vm209_vm0, %v448_v40  ;;  %v323_v20 = vmul.f32 %v1423_v19, %v1303_v7  ;;  %v355_v28 = vmul.f32 %v1423_v19, %v1108_v44  ;;  %v385_v50 = vsub.f32 %v1097_v34, %v353_v10  ;;  %v898_v10 = vmov 0  }
  0xb0   :  { %v418_v29 = vmul.f32 %v386_v63, %v322_v61  ;;  %815 = vset.pattern.permute.xlu0 %v898_v10  ;;  %813 = vset.pattern.permute.xlu2 %v898_v10 }
  0xb1   :  { %v387_v55 = vsub.f32 %v1127_v59, %v355_v28  ;;  %v417_v15 = vmul.f32 %v385_v50, %v321_v53  ;;  %814 = vset.pattern.permute.xlu1 %v898_v10 }
  0xb2   :  { %v450_v30 = vadd.f32 %v418_v29, %v1101_v39 }
  0xb3   :  { %v419_v56 = vmul.f32 %v387_v55, %v323_v20  ;;  %v449_v37 = vadd.f32 %v417_v15, %v1105_v42  ;;  %v1437_v5 = vpop.xlane.xlu1 %268 }
  0xb4   :  { %v1440_v12 = vpop.xlane.xlu0 %265  ;;  %482 = vst.msk [vmem:[#allocation6 + $0x80] sm:$0xff] %vm209_vm0, %v450_v30  ;;  %v325_v34 = vmul.f32 %v1437_v5, %v1293_v31  ;;  %v357_v23 = vmul.f32 %v1437_v5, %v1131_v62 }
  0xb5   :  { %v451_v43 = vadd.f32 %v419_v56, %v1108_v44  ;;  %481 = vst.msk [vmem:[#allocation6 + $0x78] sm:$0xff] %vm209_vm0, %v449_v37  ;;  %v356_v39 = vmul.f32 %v1440_v12, %v1143_v25  ;;  %v324_v61 = vmul.f32 %v1440_v12, %v1262_v48 }
  0xb6   :  { %v1450_v42 = vpop.xlane.xlu2 %271  ;;  %v389_v40 = vsub.f32 %v1127_v59, %v357_v23 }
  0xb7   :  { %483 = vst.msk [vmem:[#allocation6 + $0x88] sm:$0xff] %vm209_vm0, %v451_v43  ;;  %v326_v44 = vmul.f32 %v1450_v42, %v1269_v47  ;;  %v358_v1 = vmul.f32 %v1450_v42, %v1145_v26  ;;  %v388_v16 = vsub.f32 %v1127_v59, %v356_v39 }
  0xb8   :  { %v421_v28 = vmul.f32 %v389_v40, %v325_v34 }
  0xb9   :  { %v390_v20 = vsub.f32 %v1186_v13, %v358_v1  ;;  %v420_v63 = vmul.f32 %v388_v16, %v324_v61 }
  0xba   :  { %v453_v50 = vadd.f32 %v421_v28, %v1131_v62 }
  0xbb   :  { %v422_v53 = vmul.f32 %v390_v20, %v326_v44  ;;  %v452_v55 = vadd.f32 %v420_v63, %v1143_v25  ;;  %v1464_v29 = vpop.xlane.xlu1 %277 }
  0xbc   :  { %v1467_v56 = vpop.xlane.xlu0 %274  ;;  %485 = vst.msk [vmem:[#allocation6 + $0x98] sm:$0xff] %vm209_vm0, %v453_v50  ;;  %v328_v59 = vmul.f32 %v1464_v29, %v1262_v48  ;;  %v360_v30 = vmul.f32 %v1464_v29, %v1171_v52 }
  0xbd   :  { %v454_v15 = vadd.f32 %v422_v53, %v1145_v26  ;;  %484 = vst.msk [vmem:[#allocation6 + $0x90] sm:$0xff] %vm209_vm0, %v452_v55  ;;  %v359_v62 = vmul.f32 %v1467_v56, %v1188_v14  ;;  %v327_v34 = vmul.f32 %v1467_v56, %v1303_v7 }
  0xbe   :  { %v1477_v25 = vpop.xlane.xlu2 %280  ;;  %v392_v43 = vsub.f32 %v1186_v13, %v360_v30 }
  0xbf   :  { %486 = vst.msk [vmem:[#allocation6 + $0xa0] sm:$0xff] %vm209_vm0, %v454_v15  ;;  %v329_v26 = vmul.f32 %v1477_v25, %v1293_v31  ;;  %v361_v37 = vmul.f32 %v1477_v25, %v1192_v27  ;;  %v391_v23 = vsub.f32 %v1186_v13, %v359_v62 }
  0xc0   :  { %v424_v44 = vmul.f32 %v392_v43, %v328_v59 }
  0xc1   :  { %v393_v39 = vsub.f32 %v1186_v13, %v361_v37  ;;  %v423_v1 = vmul.f32 %v391_v23, %v327_v34 }
  0xc2   :  { %v456_v61 = vadd.f32 %v424_v44, %v1171_v52 }
  0xc3   :  { %v425_v40 = vmul.f32 %v393_v39, %v329_v26  ;;  %v455_v16 = vadd.f32 %v423_v1, %v1188_v14  ;;  %v1491_v10 = vpop.xlane.xlu1 %286 }
  0xc4   :  { %v1494_v28 = vpop.xlane.xlu0 %283  ;;  %488 = vst.msk [vmem:[#allocation6 + $0xb0] sm:$0xff] %vm209_vm0, %v456_v61  ;;  %v331_v63 = vmul.f32 %v1491_v10, %v1303_v7  ;;  %v363_v13 = vmul.f32 %v1491_v10, %v1215_v8 }
  0xc5   :  { %v457_v20 = vadd.f32 %v425_v40, %v1192_v27  ;;  %487 = vst.msk [vmem:[#allocation6 + $0xa8] sm:$0xff] %vm209_vm0, %v455_v16  ;;  %v362_v52 = vmul.f32 %v1494_v28, %v1116_v49  ;;  %v330_v55 = vmul.f32 %v1494_v28, %v1269_v47 }
  0xc6   :  { %v1504_v14 = vpop.xlane.xlu2 %289  ;;  %v395_v50 = vsub.f32 %v1228_v41, %v363_v13 }
  0xc7   :  { %489 = vst.msk [vmem:[#allocation6 + $0xb8] sm:$0xff] %vm209_vm0, %v457_v20  ;;  %v332_v27 = vmul.f32 %v1504_v14, %v1262_v48  ;;  %v364_v53 = vmul.f32 %v1504_v14, %v1118_v51  ;;  %v394_v15 = vsub.f32 %v1228_v41, %v362_v52 }
  0xc8   :  { %v427_v30 = vmul.f32 %v395_v50, %v331_v63 }
  0xc9   :  { %v396_v59 = vsub.f32 %v1228_v41, %v364_v53  ;;  %v426_v62 = vmul.f32 %v394_v15, %v330_v55 }
  0xca   :  { %v459_v37 = vadd.f32 %v427_v30, %v1215_v8 }
  0xcb   :  { %v428_v26 = vmul.f32 %v396_v59, %v332_v27  ;;  %v458_v43 = vadd.f32 %v426_v62, %v1116_v49  ;;  %v296_v34 = vpop.xlane.xlu1 %295 }
  0xcc   :  { %v1519_v39 = vpop.xlane.xlu0 %292  ;;  %491 = vst.msk [vmem:[#allocation6 + $0xc8] sm:$0xff] %vm209_vm0, %v459_v37  ;;  %v334_v44 = vmul.f32 %v296_v34, %v1269_v47  ;;  %v366_v1 = vmul.f32 %v296_v34, %v1156_v36 }
  0xcd   :  { %v460_v23 = vadd.f32 %v428_v26, %v1118_v51  ;;  %490 = vst.msk [vmem:[#allocation6 + $0xc0] sm:$0xff] %vm209_vm0, %v458_v43  ;;  %v365_v40 = vmul.f32 %v1519_v39, %v1158_v38  ;;  %v1683_v51 = vld [vmem:[#allocation11_spill] sm:$0xff]  ;;  %v333_v47 = vmul.f32 %v1519_v39, %v1293_v31 }
  0xce   :  { %v1527_v61 = vpop.xlane.xlu2 %298  ;;  %v398_v16 = vsub.f32 %v1239_v2, %v366_v1 }
  0xcf   :  { %492 = vst.msk [vmem:[#allocation6 + $0xd0] sm:$0xff] %vm209_vm0, %v460_v23  ;;  %v335_v49 = vmul.f32 %v1527_v61, %v1303_v7  ;;  %v367_v8 = vmul.f32 %v1527_v61, %v1683_v51  ;;  %v397_v20 = vsub.f32 %v1228_v41, %v365_v40 }
  0xd0   :  { %v430_v13 = vmul.f32 %v398_v16, %v334_v44 }
  0xd1   :  { %v399_v63 = vsub.f32 %v1239_v2, %v367_v8  ;;  %v429_v52 = vmul.f32 %v397_v20, %v333_v47 }
  0xd2   :  { %v462_v53 = vadd.f32 %v430_v13, %v1156_v36 }
  0xd3   :  { %v431_v27 = vmul.f32 %v399_v63, %v335_v49  ;;  %v461_v50 = vadd.f32 %v429_v52, %v1158_v38  ;;  %v1541_v7 = vpop.xlane.xlu1 %304 }
  0xd4   :  { %v1544_v15 = vpop.xlane.xlu0 %301  ;;  %494 = vst.msk [vmem:[#allocation6 + $0xe0] sm:$0xff] %vm209_vm0, %v462_v53  ;;  %v337_v41 = vmul.f32 %v1541_v7, %v1293_v31  ;;  %v369_v59 = vmul.f32 %v1541_v7, %v1198_v9 }
  0xd5   :  { %v463_v55 = vadd.f32 %v431_v27, %v1683_v51  ;;  %493 = vst.msk [vmem:[#allocation6 + $0xd8] sm:$0xff] %vm209_vm0, %v461_v50  ;;  %v368_v36 = vmul.f32 %v1544_v15, %v1200_v32  ;;  %v336_v31 = vmul.f32 %v1544_v15, %v1262_v48 }
  0xd6   :  { %v505_v38 = vpop.permute.xlu2 %504  ;;  %v401_v37 = vsub.f32 %v1239_v2, %v369_v59 }
  0xd7   :  { %495 = vst.msk [vmem:[#allocation6 + $0xe8] sm:$0xff] %vm209_vm0, %v463_v55  ;;  %v556_v30 = vadd.f32 %v505_v38, %v296_v34  ;;  %v532_v62 = vadd.f32 %v505_v38, %v1279_v22  ;;  %v528_v26 = vadd.f32 %v505_v38, %v1271_v21  ;;  %v400_v43 = vsub.f32 %v1239_v2, %v368_v36 }
  0xd8   :  { %v433_v23 = vmul.f32 %v401_v37, %v337_v41  ;;  %v548_v44 = vadd.f32 %v505_v38, %v1450_v42 }
  0xd9   :  { %605 = vperm.xlu0 %815, %v532_v62   ;;  %593 = vperm.xlu2 %813, %v528_v26   ;;  %v432_v1 = vmul.f32 %v400_v43, %v336_v31 }
  0xda   :  { %v465_v40 = vadd.f32 %v433_v23, %v1198_v9  ;;  %v540_v9 = vadd.f32 %v505_v38, %v1386_v0  ;;  %v536_v0 = vadd.f32 %v505_v38, %v1342_v18  ;;  %v544_v18 = vadd.f32 %v505_v38, %v1410_v6 }
  0xdb   :  { %v464_v34 = vadd.f32 %v432_v1, %v1200_v32 }
  0xdc   :  { %497 = vst.msk [vmem:[#allocation6 + $0xf8] sm:$0xff] %vm209_vm0, %v465_v40 }
  0xdd   :  { %496 = vst.msk [vmem:[#allocation6 + $0xf0] sm:$0xff] %vm209_vm0, %v464_v34 }
  0xde   :  { %v523_v42 = vpop.permute.xlu2 %522  ;;  %791 = dma.vmem_to_hbm [thread:$0]  %s784_s1, 4096, %s786_s12, [#allocation7], %s896_s29, %s896_s29, %s897_s30  }
  0xdf   :  { %v531_v32 = vadd.f32 %v523_v42, %v1297_v45  ;;  %v535_v8 = vadd.f32 %v523_v42, %v1329_v17  ;;  %v552_v17 = vadd.f32 %v505_v38, %v1494_v28  ;;  %s773_s29 = sshll.u32 %s900_s7, 4  ;;  %s774_s29 = int_to_ptr.vmem [resolvable:$true] %s773_s29 }
  0xe7   :  { %v511_v21 = vpop.permute.xlu0 %510 }
  0xe8   :  { %v529_v22 = vadd.f32 %v511_v21, %v1305_v46  ;;  %v537_v48 = vadd.f32 %v511_v21, %v1359_v33  ;;  %v533_v51 = vadd.f32 %v511_v21, %v1315_v11  ;;  %v543_v46 = vadd.f32 %v523_v42, %v1413_v60 }
  0xe9   :  { %v549_v11 = vadd.f32 %v511_v21, %v1467_v56  ;;  %v539_v60 = vadd.f32 %v523_v42, %v1369_v35  ;;  %v547_v35 = vadd.f32 %v523_v42, %v1437_v5  ;;  %v553_v6 = vadd.f32 %v511_v21, %v1491_v10 }
  0xea   :  { %596 = vperm.xlu1 %814, %v529_v22   ;;  %620 = vperm.xlu0 %815, %v537_v48   ;;  %v557_v47 = vadd.f32 %v511_v21, %v1527_v61 }
  0xeb   :  { %v517_v2 = vpop.permute.xlu1 %516 }
  0xec   :  { %v530_v49 = vadd.f32 %v517_v2, %v1264_v58  ;;  %v534_v33 = vadd.f32 %v517_v2, %v1332_v57  ;;  %v546_v58 = vadd.f32 %v517_v2, %v1440_v12  ;;  %v538_v45 = vadd.f32 %v517_v2, %v1356_v4 }
  0xed   :  { %v541_v57 = vadd.f32 %v511_v21, %v1383_v24  ;;  %v542_v12 = vadd.f32 %v517_v2, %v1396_v54  ;;  %v545_v4 = vadd.f32 %v511_v21, %v1423_v19  ;;  %v558_v56 = vadd.f32 %v517_v2, %v1544_v15 }
  0xee   :  { %599 = vperm.xlu2 %813, %v530_v49   ;;  %v550_v24 = vadd.f32 %v517_v2, %v1464_v29  ;;  %v551_v54 = vadd.f32 %v523_v42, %v1477_v25  ;;  %v1591_v19 = vand.u32 127, %v500_v3  ;;  %v554_v28 = vadd.f32 %v517_v2, %v1504_v14 }
  0xef   :  { %v555_v3 = vadd.f32 %v523_v42, %v1519_v39  ;;  %v559_v29 = vadd.f32 %v523_v42, %v1541_v7 }
  0xf0   :  { %v1605_v25 = vadd.s32 4294967280, %v1591_v19  ;;  %v1609_v61 = vadd.s32 4294967288, %v1591_v19  ;;  %v1618_v41 = vadd.s32 4294967272, %v1591_v19 }
  0xf2   :  { %629 = vperm.xlu0 %815, %v540_v9   ;;  %602 = vperm.xlu1 %814, %v531_v32  }
  0xf6   :  { %608 = vperm.xlu2 %813, %v533_v51  }
  0xfa   :  { %638 = vperm.xlu0 %815, %v543_v46   ;;  %611 = vperm.xlu1 %814, %v534_v33  }
  0xfe   :  { %614 = vperm.xlu2 %813, %v535_v8  }
 0x102   :  { %647 = vperm.xlu0 %815, %v546_v58   ;;  %617 = vperm.xlu1 %814, %v536_v0  }
 0x106   :  { %623 = vperm.xlu2 %813, %v538_v45  }
 0x10a   :  { %656 = vperm.xlu0 %815, %v549_v11   ;;  %626 = vperm.xlu1 %814, %v539_v60  }
 0x10e   :  { %632 = vperm.xlu2 %813, %v541_v57  }
 0x112   :  { %665 = vperm.xlu0 %815, %v552_v17   ;;  %635 = vperm.xlu1 %814, %v542_v12  }
 0x116   :  { %641 = vperm.xlu2 %813, %v544_v18  }
 0x11a   :  { %677 = vperm.xlu0 %815, %v556_v30   ;;  %644 = vperm.xlu1 %814, %v545_v4  }
 0x11e   :  { %650 = vperm.xlu2 %813, %v547_v35  }
 0x122   :  { %683 = vperm.xlu0 %815, %v558_v56   ;;  %653 = vperm.xlu1 %814, %v548_v44  }
 0x126   :  { %659 = vperm.xlu2 %813, %v550_v24  }
 0x12a   :  { %662 = vperm.xlu1 %814, %v551_v54  }
 0x12e   :  { %668 = vperm.xlu2 %813, %v553_v6  }
 0x132   :  { %671 = vperm.xlu1 %814, %v554_v28  }
 0x133   :  { %v594_v5 = vpop.permute.xlu2 %593 }
 0x134   :  { %v690_v16 = vperm.slane %v594_v5, %v1591_v19 }
 0x136   :  { %680 = vperm.xlu2 %813, %v557_v47  }
 0x13a   :  { %674 = vperm.xlu1 %814, %v555_v3  }
 0x13e   :  { %686 = vperm.xlu2 %813, %v559_v29  }
 0x148   :  { %v600_v10 = vpop.permute.xlu2 %599 }
 0x149   :  { %v696_v14 = vperm.slane %v600_v10, %v1605_v25 }
 0x14b   :  { %v606_v20 = vpop.permute.xlu0 %605 }
 0x14c   :  { %v703_v13 = vperm.slane %v606_v20, %v1591_v19 }
 0x150   :  { %v609_v63 = vpop.permute.xlu2 %608 }
 0x151   :  { %v704_v39 = vperm.slane %v609_v63, %v1609_v61 }
 0x153   :  { %v705_v52 = vsel %vm693_vm1, %v704_v39, %v703_v13 }
 0x158   :  { %v615_v27 = vpop.permute.xlu2 %614 }
 0x159   :  { %v708_v43 = vperm.slane %v615_v27, %v1618_v41 }
 0x15c   :  { %v597_v53 = vpop.permute.xlu1 %596  ;;  %v621_v15 = vpop.permute.xlu0 %620 }
 0x15d   :  { %v692_v50 = vperm.slane %v597_v53, %v1609_v61  ;;  %v711_v48 = vperm.slane %v621_v15, %v1609_v61 }
 0x15f   :  { %v694_v7 = vsel %vm693_vm1, %v692_v50, %v690_v16 }
 0x160   :  { %v698_v55 = vsel %vm697_vm2, %v696_v14, %v694_v7  ;;  %v624_v59 = vpop.permute.xlu2 %623 }
 0x161   :  { %v713_v49 = vperm.slane %v624_v59, %v1605_v25 }
 0x164   :  { %v603_v36 = vpop.permute.xlu1 %602  ;;  %v630_v62 = vpop.permute.xlu0 %629 }
 0x165   :  { %v700_v38 = vperm.slane %v603_v36, %v1618_v41  ;;  %v717_v0 = vperm.slane %v630_v62, %v1591_v19 }
 0x167   :  { %v702_v30 = vsel %vm701_vm3, %v700_v38, %v698_v55 }
 0x168   :  { %v633_v37 = vpop.permute.xlu2 %632 }
 0x169   :  { %v718_v58 = vperm.slane %v633_v37, %v1609_v61 }
 0x16b   :  { %v719_v60 = vsel %vm693_vm1, %v718_v58, %v717_v0 }
 0x16c   :  { %v612_v26 = vpop.permute.xlu1 %611  ;;  %v639_v34 = vpop.permute.xlu0 %638 }
 0x16d   :  { %v706_v31 = vperm.slane %v612_v26, %v1605_v25  ;;  %v722_v57 = vperm.slane %v639_v34, %v1618_v41 }
 0x16f   :  { %v707_v23 = vsel %vm697_vm2, %v706_v31, %v705_v52 }
 0x170   :  { %v709_v44 = vsel %vm701_vm3, %v708_v43, %v707_v23  ;;  %v642_v21 = vpop.permute.xlu2 %641 }
 0x171   :  { %v753_v1 = vsel %vm752_vm4, %v709_v44, %v702_v30  ;;  %v724_v24 = vperm.slane %v642_v21, %v1591_v19 }
 0x174   :  { %v618_v40 = vpop.permute.xlu1 %617  ;;  %v648_v46 = vpop.permute.xlu0 %647 }
 0x175   :  { %v710_v22 = vperm.slane %v618_v40, %v1591_v19  ;;  %v727_v6 = vperm.slane %v648_v46, %v1605_v25 }
 0x177   :  { %v712_v2 = vsel %vm693_vm1, %v711_v48, %v710_v22 }
 0x178   :  { %v714_v32 = vsel %vm697_vm2, %v713_v49, %v712_v2  ;;  %v651_v8 = vpop.permute.xlu2 %650 }
 0x179   :  { %v729_v28 = vperm.slane %v651_v8, %v1618_v41 }
 0x17c   :  { %v627_v42 = vpop.permute.xlu1 %626  ;;  %v657_v4 = vpop.permute.xlu0 %656 }
 0x17d   :  { %v715_v9 = vperm.slane %v627_v42, %v1618_v41  ;;  %v732_v63 = vperm.slane %v657_v4, %v1609_v61 }
 0x17f   :  { %v716_v51 = vsel %vm701_vm3, %v715_v9, %v714_v32 }
 0x180   :  { %v755_v33 = vsel %vm754_vm5, %v716_v51, %v753_v1  ;;  %v660_v35 = vpop.permute.xlu2 %659 }
 0x181   :  { %v734_v39 = vperm.slane %v660_v35, %v1605_v25 }
 0x184   :  { %v636_v45 = vpop.permute.xlu1 %635  ;;  %v666_v29 = vpop.permute.xlu0 %665 }
 0x185   :  { %v720_v11 = vperm.slane %v636_v45, %v1605_v25  ;;  %v738_v37 = vperm.slane %v666_v29, %v1591_v19 }
 0x187   :  { %v721_v17 = vsel %vm697_vm2, %v720_v11, %v719_v60 }
 0x188   :  { %v723_v12 = vsel %vm701_vm3, %v722_v57, %v721_v17  ;;  %v669_v14 = vpop.permute.xlu2 %668 }
 0x189   :  { %v757_v18 = vsel %vm756_vm6, %v723_v12, %v755_v33  ;;  %v739_v38 = vperm.slane %v669_v14, %v1609_v61 }
 0x18b   :  { %v740_v1 = vsel %vm693_vm1, %v739_v38, %v738_v37 }
 0x18c   :  { %v645_v56 = vpop.permute.xlu1 %644  ;;  %v678_v53 = vpop.permute.xlu0 %677 }
 0x18d   :  { %v725_v54 = vperm.slane %v645_v56, %v1609_v61  ;;  %v745_v43 = vperm.slane %v678_v53, %v1591_v19 }
 0x18f   :  { %v726_v5 = vsel %vm693_vm1, %v725_v54, %v724_v24 }
 0x190   :  { %v728_v16 = vsel %vm697_vm2, %v727_v6, %v726_v5  ;;  %v681_v7 = vpop.permute.xlu2 %680 }
 0x191   :  { %v730_v47 = vsel %vm701_vm3, %v729_v28, %v728_v16  ;;  %v746_v62 = vperm.slane %v681_v7, %v1609_v61 }
 0x192   :  { %v759_v3 = vsel %vm758_vm7, %v730_v47, %v757_v18 }
 0x193   :  { %v747_v61 = vsel %vm693_vm1, %v746_v62, %v745_v43 }
 0x194   :  { %v654_v10 = vpop.permute.xlu1 %653  ;;  %v684_v36 = vpop.permute.xlu0 %683 }
 0x195   :  { %v731_v20 = vperm.slane %v654_v10, %v1591_v19  ;;  %v748_v31 = vperm.slane %v684_v36, %v1605_v25 }
 0x197   :  { %v733_v13 = vsel %vm693_vm1, %v732_v63, %v731_v20  ;;  %v749_v19 = vsel %vm697_vm2, %v748_v31, %v747_v61 }
 0x198   :  { %v735_v50 = vsel %vm697_vm2, %v734_v39, %v733_v13  ;;  %v687_v30 = vpop.permute.xlu2 %686 }
 0x199   :  { %v750_v23 = vperm.slane %v687_v30, %v1618_v41 }
 0x19b   :  { %v751_v21 = vsel %vm701_vm3, %v750_v23, %v749_v19 }
 0x19c   :  { %v663_v52 = vpop.permute.xlu1 %662 }
 0x19d   :  { %v736_v27 = vperm.slane %v663_v52, %v1618_v41 }
 0x19f   :  { %v737_v55 = vsel %vm701_vm3, %v736_v27, %v735_v50 }
 0x1a0   :  { %v761_v15 = vsel %vm760_vm8, %v737_v55, %v759_v3 }
 0x1a4   :  { %v672_v59 = vpop.permute.xlu1 %671 }
 0x1a5   :  { %v741_v26 = vperm.slane %v672_v59, %v1605_v25 }
 0x1a7   :  { %v742_v25 = vsel %vm697_vm2, %v741_v26, %v740_v1 }
 0x1ac   :  { %v675_v44 = vpop.permute.xlu1 %674 }
 0x1ad   :  { %v743_v40 = vperm.slane %v675_v44, %v1618_v41 }
 0x1af   :  { %v744_v34 = vsel %vm701_vm3, %v743_v40, %v742_v25 }
 0x1b0   :  { %v763_v22 = vsel %vm762_vm9, %v744_v34, %v761_v15 }
 0x1b1   :  { %v765_v41 = vsel %vm764_vm10, %v751_v21, %v763_v22 }
 0x1b2   :  { %767 = vst.msk [vmem:[#allocation5] sm:$0xff] %vm209_vm0, %v765_v41 }
 0x1b3   :  { %778 = dma.vmem_to_hbm [thread:$0]  %s774_s29, 128, %s776_s13, [#allocation4]  }
 0x1b4   :  { %891 = dma.done.wait [#allocation4], 128  }
 0x1b5   :  { %892 = vsyncadd [#allocation4], 4294967168 }
 0x1b6   :  { %893 = dma.done.wait [#allocation7], 4096  }
 0x1b7   :  { %894 = vsyncadd [#allocation7], 4294963200 }
 0x1b8   :  { %800 = vsyncpa [#allocation3], 1 }
 0x1b9   :  { %801 = vsyncpa [#allocation4], 1 }
 0x1ba   :  { %802 = vsyncpa [#allocation7], 1 }

</bundles_post_ra>
